<compile_context>
chip_gen: v7x
topology: tpu7x:2x2x1
jax: 0.10.0
libtpu: 0.0.40
codegen_flags: <defaults>
</compile_context>

<pallas_src>
import functools

import jax
import jax.numpy as jnp
from jax.experimental import pallas as pl
from jax.experimental.pallas import tpu as pltpu


# ----------------------------------------------------------------------------
# Pallas kernels
# ----------------------------------------------------------------------------

def _mm_kernel(a_ref, b_ref, bias_ref, o_ref, *, act):
    acc = jnp.dot(a_ref[...], b_ref[...], preferred_element_type=jnp.float32)
    acc = acc + bias_ref[...]
    if act == "relu":
        acc = jnp.maximum(acc, 0.0)
    o_ref[...] = acc


def _choose_tm(m):
    for t in (512, 256, 128):
        if m % t == 0:
            return t
    return m


def pallas_matmul(a, b, bias=None, act="none"):
    """(M,K)@(K,N) + bias (+ReLU): M-tiled grid, bf16 MXU inputs, f32 accum."""
    M, K = a.shape
    N = b.shape[1]
    if bias is None:
        bias = jnp.zeros((N,), jnp.float32)
    tm = _choose_tm(M)
    a = a.astype(jnp.bfloat16)
    b = b.astype(jnp.bfloat16)
    bias2 = bias.reshape(1, N).astype(jnp.float32)
    return pl.pallas_call(
        functools.partial(_mm_kernel, act=act),
        out_shape=jax.ShapeDtypeStruct((M, N), jnp.float32),
        grid=(M // tm,),
        in_specs=[pl.BlockSpec((tm, K), lambda i: (i, 0)),
                  pl.BlockSpec((K, N), lambda i: (0, 0)),
                  pl.BlockSpec((1, N), lambda i: (0, 0))],
        out_specs=pl.BlockSpec((tm, N), lambda i: (i, 0)),
        compiler_params=pltpu.CompilerParams(
            dimension_semantics=("parallel",)),
    )(a, b, bias2)


def _ln(x, g, b):
    mu = jnp.mean(x, axis=-1, keepdims=True)
    xc = x - mu
    var = jnp.mean(xc * xc, axis=-1, keepdims=True)
    return xc * jax.lax.rsqrt(var + 1e-5) * g + b


def _enc_tail_kernel(h_ref, grid_ref, pos_w_ref, pos_b_ref, ln_ref,
                     w1_ref, b1_ref, w2_ref, b2_ref, o_ref):
    # pos embedding (tiny (HW,4)@(4,D) matmul folded in here)
    pos = jnp.dot(grid_ref[...], pos_w_ref[...],
                  preferred_element_type=jnp.float32) + pos_b_ref[...]
    x = h_ref[0] + pos                                   # (HW, D)
    x = _ln(x, ln_ref[0], ln_ref[1])
    y = jnp.dot(x, w1_ref[...], preferred_element_type=jnp.float32) + b1_ref[...]
    y = jnp.maximum(y, 0.0)
    y = jnp.dot(y, w2_ref[...], preferred_element_type=jnp.float32) + b2_ref[...]
    o_ref[0] = y


def pallas_encoder_tail(h, grid_coords, p, D):
    """Fused pos-embed + LayerNorm + 2-layer MLP over (B, HW, D)."""
    B, HW, _ = h.shape
    ln = jnp.stack([p["enc_ln_g"], p["enc_ln_b"]], axis=0)
    return pl.pallas_call(
        _enc_tail_kernel,
        out_shape=jax.ShapeDtypeStruct((B, HW, D), jnp.float32),
        grid=(B,),
        in_specs=[
            pl.BlockSpec((1, HW, D), lambda b: (b, 0, 0)),
            pl.BlockSpec((HW, 4), lambda b: (0, 0)),
            pl.BlockSpec((4, D), lambda b: (0, 0)),
            pl.BlockSpec((1, D), lambda b: (0, 0)),
            pl.BlockSpec((2, D), lambda b: (0, 0)),
            pl.BlockSpec((D, D), lambda b: (0, 0)),
            pl.BlockSpec((1, D), lambda b: (0, 0)),
            pl.BlockSpec((D, D), lambda b: (0, 0)),
            pl.BlockSpec((1, D), lambda b: (0, 0)),
        ],
        out_specs=pl.BlockSpec((1, HW, D), lambda b: (b, 0, 0)),
        compiler_params=pltpu.CompilerParams(
            dimension_semantics=("parallel",)),
    )(h.astype(jnp.float32), grid_coords.astype(jnp.float32),
      p["enc_pos_w"], p["enc_pos_b"].reshape(1, D), ln,
      p["enc_mlp_w1"], p["enc_mlp_b1"].reshape(1, D),
      p["enc_mlp_w2"], p["enc_mlp_b2"].reshape(1, D))


def _slot_attention_kernel(inp_ref, slots_ref, ln_in_ref, wqkv_ref, ln_slot_ref,
                           w_iht_ref, b_ih_ref, w_hht_ref, b_hh_ref,
                           ln_pre_ref, w1_ref, b1_ref, w2_ref, b2_ref,
                           out_ref, *, iters, scale, eps):
    # One kernel per batch element: all `iters` iterations run in-kernel,
    # K and V stay resident on-chip the entire time.
    inp = _ln(inp_ref[0], ln_in_ref[0], ln_in_ref[1])           # (N, D)
    wq = wqkv_ref[0]
    wk = wqkv_ref[1]
    wv = wqkv_ref[2]
    k = jnp.dot(inp, wk, preferred_element_type=jnp.float32)    # (N, D)
    v = jnp.dot(inp, wv, preferred_element_type=jnp.float32)    # (N, D)

    def sig(x):
        return 1.0 / (1.0 + jnp.exp(-x))

    slots = slots_ref[0]                                        # (S, D)
    for _ in range(iters):                                      # unrolled
        slots_prev = slots
        sn = _ln(slots, ln_slot_ref[0], ln_slot_ref[1])
        q = jnp.dot(sn, wq, preferred_element_type=jnp.float32)        # (S, D)
        dots = jax.lax.dot_general(q, k, (((1,), (1,)), ((), ())),
                                   preferred_element_type=jnp.float32) * scale
        # softmax over the SLOT axis (competition among slots)
        dots = dots - jnp.max(dots, axis=0, keepdims=True)
        e = jnp.exp(dots)
        attn = e / jnp.sum(e, axis=0, keepdims=True)
        attn = attn + eps
        attn = attn / jnp.sum(attn, axis=-1, keepdims=True)      # weighted mean
        updates = jnp.dot(attn, v, preferred_element_type=jnp.float32)  # (S, D)

        # GRUCell (gate weights pre-split per gate -> no lane slicing)
        gi_r = jnp.dot(updates, w_iht_ref[0], preferred_element_type=jnp.float32) + b_ih_ref[0]
        gi_z = jnp.dot(updates, w_iht_ref[1], preferred_element_type=jnp.float32) + b_ih_ref[1]
        gi_n = jnp.dot(updates, w_iht_ref[2], preferred_element_type=jnp.float32) + b_ih_ref[2]
        gh_r = jnp.dot(slots_prev, w_hht_ref[0], preferred_element_type=jnp.float32) + b_hh_ref[0]
        gh_z = jnp.dot(slots_prev, w_hht_ref[1], preferred_element_type=jnp.float32) + b_hh_ref[1]
        gh_n = jnp.dot(slots_prev, w_hht_ref[2], preferred_element_type=jnp.float32) + b_hh_ref[2]
        r = sig(gi_r + gh_r)
        zg = sig(gi_z + gh_z)
        n = jnp.tanh(gi_n + r * gh_n)
        slots = (1.0 - zg) * n + zg * slots_prev

        # residual MLP
        y = _ln(slots, ln_pre_ref[0], ln_pre_ref[1])
        y = jnp.dot(y, w1_ref[...], preferred_element_type=jnp.float32) + b1_ref[...]
        y = jnp.maximum(y, 0.0)
        y = jnp.dot(y, w2_ref[...], preferred_element_type=jnp.float32) + b2_ref[...]
        slots = slots + y

    out_ref[0] = slots


def slot_attention(p, inputs, num_slots, iters, key):
    B, N, D = inputs.shape
    S = num_slots
    scale = D ** -0.5

    noise = jax.random.normal(key, (B, S, D), dtype=jnp.float32)
    slots0 = (p["sa_mu"] + jnp.exp(p["sa_log_sigma"]) * noise).astype(jnp.float32)

    ln_in = jnp.stack([p["sa_ln_in_g"], p["sa_ln_in_b"]], axis=0)
    ln_slot = jnp.stack([p["sa_ln_slot_g"], p["sa_ln_slot_b"]], axis=0)
    ln_pre = jnp.stack([p["sa_ln_pre_g"], p["sa_ln_pre_b"]], axis=0)
    wqkv = jnp.stack([p["sa_wq"], p["sa_wk"], p["sa_wv"]], axis=0)
    # PyTorch GRUCell layout: weight_ih (3D, D), gates ordered [r, z, n]
    w_iht = jnp.stack([p["gru_w_ih"][g * D:(g + 1) * D].T for g in range(3)], 0)
    b_ih = p["gru_b_ih"].reshape(3, D)
    w_hht = jnp.stack([p["gru_w_hh"][g * D:(g + 1) * D].T for g in range(3)], 0)
    b_hh = p["gru_b_hh"].reshape(3, D)
    Hm = p["sa_mlp_w1"].shape[1]

    return pl.pallas_call(
        functools.partial(_slot_attention_kernel, iters=iters, scale=scale,
                          eps=1e-8),
        out_shape=jax.ShapeDtypeStruct((B, S, D), jnp.float32),
        grid=(B,),
        in_specs=[
            pl.BlockSpec((1, N, D), lambda b: (b, 0, 0)),   # inputs
            pl.BlockSpec((1, S, D), lambda b: (b, 0, 0)),   # initial slots
            pl.BlockSpec((2, D), lambda b: (0, 0)),         # ln_in
            pl.BlockSpec((3, D, D), lambda b: (0, 0, 0)),   # wq|wk|wv
            pl.BlockSpec((2, D), lambda b: (0, 0)),         # ln_slot
            pl.BlockSpec((3, D, D), lambda b: (0, 0, 0)),   # gru w_ih (per gate)
            pl.BlockSpec((3, D), lambda b: (0, 0)),         # gru b_ih
            pl.BlockSpec((3, D, D), lambda b: (0, 0, 0)),   # gru w_hh (per gate)
            pl.BlockSpec((3, D), lambda b: (0, 0)),         # gru b_hh
            pl.BlockSpec((2, D), lambda b: (0, 0)),         # ln_pre
            pl.BlockSpec((D, Hm), lambda b: (0, 0)),        # mlp w1
            pl.BlockSpec((1, Hm), lambda b: (0, 0)),        # mlp b1
            pl.BlockSpec((Hm, D), lambda b: (0, 0)),        # mlp w2
            pl.BlockSpec((1, D), lambda b: (0, 0)),         # mlp b2
        ],
        out_specs=pl.BlockSpec((1, S, D), lambda b: (b, 0, 0)),
        compiler_params=pltpu.CompilerParams(
            dimension_semantics=("parallel",)),
    )(inputs.astype(jnp.float32), slots0, ln_in, wqkv, ln_slot,
      w_iht, b_ih, w_hht, b_hh, ln_pre,
      p["sa_mlp_w1"], p["sa_mlp_b1"].reshape(1, Hm),
      p["sa_mlp_w2"], p["sa_mlp_b2"].reshape(1, D))


def _recon_kernel(img_ref, ml_ref, x_ref, mask_ref, sse_ref):
    # img_ref: (1, 3, S, HW), ml_ref: (1, S, HW), x_ref: (1, 3, HW)
    ml = ml_ref[0]                                        # (S, HW)
    ml = ml - jnp.max(ml, axis=0, keepdims=True)
    e = jnp.exp(ml)
    m = e / jnp.sum(e, axis=0, keepdims=True)             # softmax over slots
    mask_ref[0] = m
    rec = jnp.sum(img_ref[0] * m[None, :, :], axis=1)     # (3, HW)
    diff = x_ref[0] - rec
    sse_ref[...] = jnp.sum(diff * diff).reshape(1, 1, 1)  # per-batch SSE


def pallas_recon(img, mlog, x):
    B, _, S, HW = img.shape
    return pl.pallas_call(
        _recon_kernel,
        out_shape=(jax.ShapeDtypeStruct((B, S, HW), jnp.float32),
                   jax.ShapeDtypeStruct((B, 1, 1), jnp.float32)),
        grid=(B,),
        in_specs=[pl.BlockSpec((1, 3, S, HW), lambda b: (b, 0, 0, 0)),
                  pl.BlockSpec((1, S, HW), lambda b: (b, 0, 0)),
                  pl.BlockSpec((1, 3, HW), lambda b: (b, 0, 0))],
        out_specs=(pl.BlockSpec((1, S, HW), lambda b: (b, 0, 0)),
                   pl.BlockSpec((1, 1, 1), lambda b: (b, 0, 0))),
        compiler_params=pltpu.CompilerParams(
            dimension_semantics=("parallel",)),
    )(img, mlog, x)


# ----------------------------------------------------------------------------
# JAX glue: im2col conv, position grid, parameters
# ----------------------------------------------------------------------------

def im2col_5x5(x):
    # x: (B, C, H, W) -> (B*H*W, C*25) with (C, kh, kw) flattening order
    # TODO(synk): a direct in-kernel conv (shifted-view accumulation) would
    # avoid the 25x HBM patch blowup; kept as im2col (in bf16) for robustness.
    B, C, H, W = x.shape
    xp = jnp.pad(x, ((0, 0), (0, 0), (2, 2), (2, 2)))
    cols = []
    for kh in range(5):
        for kw in range(5):
            cols.append(xp[:, :, kh:kh + H, kw:kw + W])
    patches = jnp.stack(cols, axis=2)                     # (B, C, 25, H, W)
    patches = patches.transpose(0, 3, 4, 1, 2).reshape(B * H * W, C * 25)
    return patches


def conv2d_5x5(x, w, b, act):
    # x: (B, C, H, W), w: (O, C, 5, 5) (PyTorch layout), same padding
    B, C, H, W = x.shape
    O = w.shape[0]
    patches = im2col_5x5(x.astype(jnp.bfloat16))          # bf16 patches
    w2 = w.reshape(O, C * 25).T.astype(jnp.bfloat16)
    y = pallas_matmul(patches, w2, b, act=act)            # (B*H*W, O) f32
    return y.reshape(B, H, W, O).transpose(0, 3, 1, 2)


def build_grid(H, W):
    ys = jnp.linspace(0.0, 1.0, H)
    xs = jnp.linspace(0.0, 1.0, W)
    gy, gx = jnp.meshgrid(ys, xs, indexing="ij")
    return jnp.stack([gy, gx, 1.0 - gy, 1.0 - gx], axis=-1).astype(jnp.float32)


def init_params(key, D, C_in, mlp_hidden):
    ks = list(jax.random.split(key, 32))
    it = iter(ks)

    def nrm(shape, scale):
        return (scale * jax.random.normal(next(it), shape)).astype(jnp.float32)

    z = lambda *s: jnp.zeros(s, jnp.float32)
    p = {}
    # encoder
    p["enc_conv1_w"] = nrm((D, C_in, 5, 5), 0.08); p["enc_conv1_b"] = z(D)
    p["enc_conv2_w"] = nrm((D, D, 5, 5), 0.05);    p["enc_conv2_b"] = z(D)
    p["enc_pos_w"] = nrm((4, D), 0.1);             p["enc_pos_b"] = z(D)
    p["enc_ln_g"] = jnp.ones((D,), jnp.float32);   p["enc_ln_b"] = z(D)
    p["enc_mlp_w1"] = nrm((D, D), 0.1);            p["enc_mlp_b1"] = z(D)
    p["enc_mlp_w2"] = nrm((D, D), 0.1);            p["enc_mlp_b2"] = z(D)
    # slot attention
    p["sa_mu"] = nrm((1, 1, D), 0.1)
    p["sa_log_sigma"] = nrm((1, 1, D), 0.1) - 2.0
    p["sa_ln_in_g"] = jnp.ones((D,), jnp.float32);   p["sa_ln_in_b"] = z(D)
    p["sa_ln_slot_g"] = jnp.ones((D,), jnp.float32); p["sa_ln_slot_b"] = z(D)
    p["sa_ln_pre_g"] = jnp.ones((D,), jnp.float32);  p["sa_ln_pre_b"] = z(D)
    p["sa_wq"] = nrm((D, D), 0.1)
    p["sa_wk"] = nrm((D, D), 0.1)
    p["sa_wv"] = nrm((D, D), 0.1)
    p["gru_w_ih"] = nrm((3 * D, D), 0.1); p["gru_b_ih"] = z(3 * D)
    p["gru_w_hh"] = nrm((3 * D, D), 0.1); p["gru_b_hh"] = z(3 * D)
    p["sa_mlp_w1"] = nrm((D, mlp_hidden), 0.1); p["sa_mlp_b1"] = z(mlp_hidden)
    p["sa_mlp_w2"] = nrm((mlp_hidden, D), 0.1); p["sa_mlp_b2"] = z(D)
    # decoder
    p["dec_pos_w"] = nrm((4, D), 0.1);          p["dec_pos_b"] = z(D)
    p["dec_conv1_w"] = nrm((D, D, 5, 5), 0.05); p["dec_conv1_b"] = z(D)
    p["dec_conv2_w"] = nrm((D, D, 5, 5), 0.05); p["dec_conv2_b"] = z(D)
    p["dec_conv3_w"] = nrm((4, D, 5, 5), 0.05); p["dec_conv3_b"] = z(4)
    return p


# ----------------------------------------------------------------------------
# Model pieces
# ----------------------------------------------------------------------------

def encoder(p, x, D):
    B, C, H, W = x.shape
    h = conv2d_5x5(x, p["enc_conv1_w"], p["enc_conv1_b"], act="relu")
    h = conv2d_5x5(h, p["enc_conv2_w"], p["enc_conv2_b"], act="relu")
    h = h.transpose(0, 2, 3, 1).reshape(B, H * W, D)
    grid = build_grid(H, W).reshape(H * W, 4)
    h = pallas_encoder_tail(h, grid, p, D)          # fused pos + LN + MLP
    # encoder emits (B, C_feat, N); the AE forward permutes it back to (B, N, C)
    return h.transpose(0, 2, 1)


def decoder(p, slots_flat, D, W_b, H_b):
    # slots_flat: (B*S, D) spatially broadcast to (B*S, D, W_b, H_b)
    # NOTE: position grid built over (W_b, H_b), consistent with the broadcast
    # spatial dims (test case is square, so encoder/decoder grids agree).
    BS = slots_flat.shape[0]
    z = jnp.broadcast_to(slots_flat[:, :, None, None], (BS, D, W_b, H_b))
    grid = build_grid(W_b, H_b).reshape(W_b * H_b, 4)
    pos = pallas_matmul(grid, p["dec_pos_w"], p["dec_pos_b"])
    pos = pos.reshape(W_b, H_b, D).transpose(2, 0, 1)
    z = z + pos[None]
    h = conv2d_5x5(z, p["dec_conv1_w"], p["dec_conv1_b"], act="relu")
    h = conv2d_5x5(h, p["dec_conv2_w"], p["dec_conv2_b"], act="relu")
    return conv2d_5x5(h, p["dec_conv3_w"], p["dec_conv3_b"], act="none")  # (B*S,4,W,H)


def slot_attention_ae_forward(params, x, *, num_slots, iters, D, slot_key):
    B, C, H, W = x.shape
    x = x * 2.0 - 1.0
    encoded = encoder(params, x, D)                     # (B, D, N)
    encoded = jnp.transpose(encoded, (0, 2, 1))         # permute(0, 2, 1)
    z = slot_attention(params, encoded, num_slots, iters, slot_key)  # (B, S, D)

    slots_flat = z.reshape(B * num_slots, D)            # flatten(0, 1)
    slots_masks = decoder(params, slots_flat, D, W, H)  # (B*S, 4, W, H)
    img_slots = slots_masks[:, :3].reshape(B, num_slots, 3, H, W)
    mask_logits = slots_masks[:, 3:].reshape(B, num_slots, H, W)

    HW = H * W
    img_for_kernel = img_slots.transpose(0, 2, 1, 3, 4).reshape(B, 3, num_slots, HW)
    mlog = mask_logits.reshape(B, num_slots, HW)
    x_flat = x.reshape(B, 3, HW)

    masks, sse = pallas_recon(img_for_kernel, mlog, x_flat)
    loss = jnp.sum(sse) / (B * 3.0 * HW)                # MSELoss(x, recon_img)
    masks = masks.reshape(B, num_slots, 1, H, W)
    recon_slots_output = (img_slots + 1.0) / 2.0
    return dict(loss=loss, z=z, mask=masks, slot=recon_slots_output)


# ----------------------------------------------------------------------------
if __name__ == "__main__":
    B, C, H, W = 2, 3, 16, 16
    D, S, ITERS = 32, 4, 3

    key = jax.random.PRNGKey(0)
    kp, kx, ks = jax.random.split(key, 3)
    params = init_params(kp, D, C, mlp_hidden=64)
    x = jax.random.uniform(kx, (B, C, H, W), dtype=jnp.float32)

    out = slot_attention_ae_forward(params, x, num_slots=S, iters=ITERS, D=D,
                                    slot_key=ks)
    out = jax.block_until_ready(out)

    assert out["z"].shape == (B, S, D)
    assert out["mask"].shape == (B, S, 1, H, W)
    assert out["slot"].shape == (B, S, 3, H, W)
    assert out["loss"].shape == ()
    assert bool(jnp.isfinite(out["loss"]))
    # TODO(synk): encoder/decoder/slot-attention sub-module hyperparameters are
    # not specified in the given code; a standard Slot-Attention AE architecture
    # (2-conv encoder + pos-embed + MLP, 3-conv broadcast decoder, 3-iter SA) is used.
    print("KERNEL_OK")
</pallas_src>

<mosaic_0001>
module attributes {stable_mosaic.version = 11 : i64} {
  func.func @_mm_kernel(%arg0: i32, %arg1: memref<512x75xbf16, #tpu.memory_space<vmem>>, %arg2: memref<75x32xbf16, #tpu.memory_space<vmem>>, %arg3: memref<1x32xf32, #tpu.memory_space<vmem>>, %arg4: memref<512x32xf32, #tpu.memory_space<vmem>>) attributes {dimension_semantics = [#tpu.dimension_semantics<parallel>], iteration_bounds = array<i64: 1>, scalar_prefetch = 0 : i64, scratch_operands = 0 : i64, tpu.core_type = #tpu.core_type<tc>, window_params = [{transform_indices = @transform_0, window_bounds = array<i64: 512, 75>}, {pipeline_mode = #tpu.pipeline_mode<synchronous>, transform_indices = @transform_1, window_bounds = array<i64: 75, 32>}, {pipeline_mode = #tpu.pipeline_mode<synchronous>, transform_indices = @transform_2, window_bounds = array<i64: 1, 32>}, {transform_indices = @transform_3, window_bounds = array<i64: 512, 32>}]} {
    %c0 = arith.constant 0 : index
    %c0_0 = arith.constant 0 : index
    %0 = vector.load %arg1[%c0, %c0_0] : memref<512x75xbf16, #tpu.memory_space<vmem>>, vector<512x75xbf16>
    %c0_1 = arith.constant 0 : index
    %c0_2 = arith.constant 0 : index
    %1 = vector.load %arg2[%c0_1, %c0_2] : memref<75x32xbf16, #tpu.memory_space<vmem>>, vector<75x32xbf16>
    %cst = arith.constant dense<0.000000e+00> : vector<512x32xf32>
    %2 = tpu.matmul %0, %1, %cst {dimension_numbers = #tpu.dot_dimension_numbers<[1], [0], [0], [1], [0, 0, 1, 1], [], []>} : vector<512x75xbf16>, vector<75x32xbf16>, vector<512x32xf32> -> vector<512x32xf32>
    %c0_3 = arith.constant 0 : index
    %c0_4 = arith.constant 0 : index
    %3 = vector.load %arg3[%c0_3, %c0_4] : memref<1x32xf32, #tpu.memory_space<vmem>>, vector<1x32xf32>
    %4 = vector.broadcast %3 : vector<1x32xf32> to vector<512x32xf32>
    %5 = arith.addf %2, %4 : vector<512x32xf32>
    %cst_5 = arith.constant 0.000000e+00 : f32
    %6 = vector.broadcast %cst_5 : f32 to vector<512x32xf32>
    %7 = arith.maximumf %5, %6 : vector<512x32xf32>
    %c0_6 = arith.constant 0 : index
    %c0_7 = arith.constant 0 : index
    %8 = vector.load %arg4[%c0_6, %c0_7] : memref<512x32xf32, #tpu.memory_space<vmem>>, vector<512x32xf32>
    tpu.vector_store %arg4[%c0_6, %c0_7], %7 {strides = array<i32>} : memref<512x32xf32, #tpu.memory_space<vmem>>, vector<512x32xf32>,
    return
  }
  func.func @transform_0(%arg0: i32) -> (i32, i32) {
    %c0_i32 = arith.constant 0 : i32
    %c0_i32_0 = arith.constant 0 : i32
    return %arg0, %c0_i32 : i32, i32
  }
  func.func @transform_1(%arg0: i32) -> (i32, i32) {
    %c0_i32 = arith.constant 0 : i32
    %c0_i32_0 = arith.constant 0 : i32
    %c0_i32_1 = arith.constant 0 : i32
    return %c0_i32, %c0_i32_0 : i32, i32
  }
  func.func @transform_2(%arg0: i32) -> (i32, i32) {
    %c0_i32 = arith.constant 0 : i32
    %c0_i32_0 = arith.constant 0 : i32
    %c0_i32_1 = arith.constant 0 : i32
    return %c0_i32, %c0_i32_0 : i32, i32
  }
  func.func @transform_3(%arg0: i32) -> (i32, i32) {
    %c0_i32 = arith.constant 0 : i32
    %c0_i32_0 = arith.constant 0 : i32
    return %arg0, %c0_i32 : i32, i32
  }
}

</mosaic_0001>

<bundles_post_ra>
// kernel: tpu_custom_call.1
= control target key start
LH: loop header
LB: loop body
LE: loop exit
PB: predicated region body
PF: predicated region fallthrough
CT: control target
= control target key end

     0   :  { %vm382_vm0 = vcmask 1044480   ;;  %vm383_vm1 = vcmask 1045504   ;;  %vm285_vm2 = vcmask 613376   ;;  %v1040_v4 = vmov 65535   ;;  %s1529_s1 = inlined_call_operand.vmem [shape: bf16[75,32], index: 1, kind: input, shape index: {}]   ;;  %s1530_s0 = inlined_call_operand.vmem [shape: bf16[512,75], index: 0, kind: input, shape index: {}]   ;;  %s1531_s2 = inlined_call_operand.vmem [shape: f32[1,32], index: 2, kind: input, shape index: {}]   ;;  %s1532_s3 = inlined_call_operand.vmem [shape: f32[512,32], index: 3, kind: output, shape index: {}]  }
   0x1   :  { %v1003_v0 = vld [vmem:[%s1529_s1] sm:$0xff]   ;;  %v1004_v1 = vld [vmem:[%s1529_s1 + $0x8] sm:$0xff]   ;;  %v1005_v2 = vld [vmem:[%s1529_s1 + $0x10] sm:$0xff]   ;;  %v384_v5 = vsel %vm382_vm0, 4294967295, %v1040_v4  ;;  %vm742_vm3 = vcmask 261120  }
   0x2   :  { %918 = vmatprep.subr.bf16.mxu0 %v1003_v0  ;;  %992 = vmatprep.subr.bf16.mxu1 %v1003_v0  ;;  %v1008_v3 = vld [vmem:[%s1530_s0] sm:$0xff]   ;;  %v1006_v7 = vld [vmem:[%s1529_s1 + $0x18] sm:$0xff]   ;;  %v385_v9 = vsel %vm383_vm1, %v384_v5, 0  ;;  %v1010_v11 = vld [vmem:[%s1530_s0 + $0x8] sm:$0xff]  }
   0x3   :  { %919 = vmatpush3.bf16.msra.mxu0 %v1003_v0  ;;  %997 = vmatpush3.bf16.msra.mxu1 %v1003_v0  ;;  %v1009_v6 = vld [vmem:[%s1530_s0 + $0x80] sm:$0xff]   ;;  %v1011_v12 = vld [vmem:[%s1530_s0 + $0x88] sm:$0xff]   ;;  %v1012_v13 = vld [vmem:[%s1530_s0 + $0x10] sm:$0xff]  }
   0x4   :  { %920 = vmatprep.subr.bf16.mxu0 %v1004_v1  ;;  %993 = vmatprep.subr.bf16.mxu1 %v1004_v1  ;;  %v1007_v8 = vld [vmem:[%s1529_s1 + $0x20] sm:$0x3f]   ;;  %v1013_v14 = vld [vmem:[%s1530_s0 + $0x90] sm:$0xff]   ;;  %v1014_v15 = vld [vmem:[%s1530_s0 + $0x18] sm:$0xff]  }
   0x5   :  { %928 = vmatprep.mubr.msk.bf16.mxu0 %vm285_vm2, %v1008_v3  ;;  %960 = vmatprep.mubr.msk.bf16.mxu1 %vm285_vm2, %v1009_v6  ;;  %v387_v10 = vand.u32 %v1007_v8, %v385_v9  ;;  %v1015_v16 = vld [vmem:[%s1530_s0 + $0x98] sm:$0xff]   ;;  %v1016_v17 = vld [vmem:[%s1530_s0 + $0x20] sm:$0xff]   ;;  %v1018_v19 = vld [vmem:[%s1530_s0 + $0x28] sm:$0xff]  }
   0x6   :  { %v1017_v18 = vld [vmem:[%s1530_s0 + $0xa0] sm:$0xff]   ;;  %v1019_v20 = vld [vmem:[%s1530_s0 + $0xa8] sm:$0xff]   ;;  %v1020_v21 = vld [vmem:[%s1530_s0 + $0x30] sm:$0xff]  }
   0x7   :  { %921 = vmatpush3.bf16.msra.mxu0 %v1004_v1  ;;  %998 = vmatpush3.bf16.msra.mxu1 %v1004_v1  ;;  %v1021_v22 = vld [vmem:[%s1530_s0 + $0xb0] sm:$0xff]   ;;  %v1022_v23 = vld [vmem:[%s1530_s0 + $0x38] sm:$0xff]   ;;  %v1024_v25 = vld [vmem:[%s1530_s0 + $0x40] sm:$0xff]  }
   0x8   :  { %922 = vmatprep.subr.bf16.mxu0 %v1005_v2  ;;  %994 = vmatprep.subr.bf16.mxu1 %v1005_v2  ;;  %v1023_v24 = vld [vmem:[%s1530_s0 + $0xb8] sm:$0xff]   ;;  %v1025_v26 = vld [vmem:[%s1530_s0 + $0xc0] sm:$0xff]   ;;  %v1026_v27 = vld [vmem:[%s1530_s0 + $0x48] sm:$0xff]  }
   0x9   :  { %v1027_v28 = vld [vmem:[%s1530_s0 + $0xc8] sm:$0xff]   ;;  %v1028_v29 = vld [vmem:[%s1530_s0 + $0x50] sm:$0xff]   ;;  %v1030_v31 = vld [vmem:[%s1530_s0 + $0x58] sm:$0xff]  }
   0xa   :  { %v1029_v30 = vld [vmem:[%s1530_s0 + $0xd0] sm:$0xff]   ;;  %v1031_v32 = vld [vmem:[%s1530_s0 + $0xd8] sm:$0xff]   ;;  %v1032_v33 = vld [vmem:[%s1530_s0 + $0x60] sm:$0xff]  }
   0xb   :  { %923 = vmatpush3.bf16.msra.mxu0 %v1005_v2  ;;  %999 = vmatpush3.bf16.msra.mxu1 %v1005_v2  ;;  %v1033_v34 = vld [vmem:[%s1530_s0 + $0xe0] sm:$0xff]   ;;  %v1034_v35 = vld [vmem:[%s1530_s0 + $0x68] sm:$0xff]   ;;  %v1036_v37 = vld [vmem:[%s1530_s0 + $0x70] sm:$0xff]  }
   0xc   :  { %924 = vmatprep.subr.bf16.mxu0 %v1006_v7  ;;  %995 = vmatprep.subr.bf16.mxu1 %v1006_v7  ;;  %v1035_v36 = vld [vmem:[%s1530_s0 + $0xe8] sm:$0xff]   ;;  %v1037_v38 = vld [vmem:[%s1530_s0 + $0xf0] sm:$0xff]   ;;  %v1038_v39 = vld [vmem:[%s1530_s0 + $0x78] sm:$0xff]  }
   0xd   :  { %v1039_v40 = vld [vmem:[%s1530_s0 + $0xf8] sm:$0xff]   ;;  %v1207_v41 = vld [vmem:[%s1531_s2] ss:$0 sm:$0xff] }
   0xf   :  { %925 = vmatpush3.bf16.msra.mxu0 %v1006_v7  ;;  %1000 = vmatpush3.bf16.msra.mxu1 %v1006_v7 }
  0x10   :  { %926 = vmatprep.subr.bf16.mxu0 %v387_v10  ;;  %996 = vmatprep.subr.bf16.mxu1 %v387_v10 }
  0x13   :  { %927 = vmatpush3.bf16.msra.mxu0 %v387_v10  ;;  %1001 = vmatpush3.bf16.msra.mxu1 %v387_v10 }
  0x16   :  { %929 = vmatmul.mubr.msk.bf16.vlgmr.msra.gmra.mrb[0].mxu0 %vm285_vm2, %v1010_v11  ;;  %961 = vmatmul.mubr.msk.bf16.vlgmr.msra.gmra.mrb[0].mxu1 %vm285_vm2, %v1011_v12 }
  0x17   :  { %932 = vmatprep.mubr.msk.bf16.mxu0 %vm285_vm2, %v1012_v13  ;;  %964 = vmatprep.mubr.msk.bf16.mxu1 %vm285_vm2, %v1013_v14 }
  0x1e   :  { %933 = vmatmul.mubr.msk.bf16.gmra.mrb[4].mxu0 %vm285_vm2, %v1014_v15  ;;  %965 = vmatmul.mubr.msk.bf16.gmra.mrb[4].mxu1 %vm285_vm2, %v1015_v16 }
  0x1f   :  { %936 = vmatprep.mubr.msk.bf16.mxu0 %vm285_vm2, %v1016_v17  ;;  %968 = vmatprep.mubr.msk.bf16.mxu1 %vm285_vm2, %v1017_v18 }
  0x26   :  { %937 = vmatmul.mubr.msk.bf16.gmra.mrb[8].mxu0 %vm285_vm2, %v1018_v19  ;;  %969 = vmatmul.mubr.msk.bf16.gmra.mrb[8].mxu1 %vm285_vm2, %v1019_v20 }
  0x27   :  { %940 = vmatprep.mubr.msk.bf16.mxu0 %vm285_vm2, %v1020_v21  ;;  %972 = vmatprep.mubr.msk.bf16.mxu1 %vm285_vm2, %v1021_v22 }
  0x2e   :  { %941 = vmatmul.mubr.msk.bf16.gmra.mrb[12].mxu0 %vm285_vm2, %v1022_v23  ;;  %973 = vmatmul.mubr.msk.bf16.gmra.mrb[12].mxu1 %vm285_vm2, %v1023_v24 }
  0x2f   :  { %944 = vmatprep.mubr.msk.bf16.mxu0 %vm285_vm2, %v1024_v25  ;;  %976 = vmatprep.mubr.msk.bf16.mxu1 %vm285_vm2, %v1025_v26 }
  0x36   :  { %945 = vmatmul.mubr.msk.bf16.gmra.mrb[16].mxu0 %vm285_vm2, %v1026_v27  ;;  %977 = vmatmul.mubr.msk.bf16.gmra.mrb[16].mxu1 %vm285_vm2, %v1027_v28 }
  0x37   :  { %948 = vmatprep.mubr.msk.bf16.mxu0 %vm285_vm2, %v1028_v29  ;;  %980 = vmatprep.mubr.msk.bf16.mxu1 %vm285_vm2, %v1029_v30 }
  0x3e   :  { %949 = vmatmul.mubr.msk.bf16.gmra.mrb[20].mxu0 %vm285_vm2, %v1030_v31  ;;  %981 = vmatmul.mubr.msk.bf16.gmra.mrb[20].mxu1 %vm285_vm2, %v1031_v32 }
  0x3f   :  { %952 = vmatprep.mubr.msk.bf16.mxu0 %vm285_vm2, %v1032_v33  ;;  %984 = vmatprep.mubr.msk.bf16.mxu1 %vm285_vm2, %v1033_v34 }
  0x46   :  { %953 = vmatmul.mubr.msk.bf16.gmra.mrb[24].mxu0 %vm285_vm2, %v1034_v35  ;;  %985 = vmatmul.mubr.msk.bf16.gmra.mrb[24].mxu1 %vm285_vm2, %v1035_v36 }
  0x47   :  { %956 = vmatprep.mubr.msk.bf16.mxu0 %vm285_vm2, %v1036_v37  ;;  %988 = vmatprep.mubr.msk.bf16.mxu1 %vm285_vm2, %v1037_v38 }
  0x4e   :  { %957 = vmatmul.mubr.msk.bf16.gmra.mrb[28].mxu0 %vm285_vm2, %v1038_v39  ;;  %989 = vmatmul.mubr.msk.bf16.gmra.mrb[28].mxu1 %vm285_vm2, %v1039_v40 }
  0xe9   :  { %v930_v42 = vpop.f32.mrb[0].mxu0  ;;  %v962_v43 = vpop.f32.mrb[0].mxu1 }
  0xea   :  { %v432_v44 = vadd.f32 %v930_v42, %v1207_v41  ;;  %v560_v45 = vadd.f32 %v962_v43, %v1207_v41  ;;  %v423_v46 = vpop.f32.mrb[1].mxu0  ;;  %v551_v47 = vpop.f32.mrb[1].mxu1 }
  0xeb   :  { %v424_v48 = vadd.f32 %v1207_v41, %v423_v46  ;;  %v552_v49 = vadd.f32 %v1207_v41, %v551_v47  ;;  %v931_v50 = vpop.f32.mrb[2].mxu0  ;;  %v963_v51 = vpop.f32.mrb[2].mxu1 }
  0xec   :  { %v680_v52 = vmax.f32 %v432_v44, 0.0  ;;  %v712_v53 = vmax.f32 %v560_v45, 0.0  ;;  %v435_v54 = vadd.f32 %v931_v50, %v1207_v41  ;;  %v563_v55 = vadd.f32 %v963_v51, %v1207_v41  ;;  %v426_v56 = vpop.f32.mrb[3].mxu0  ;;  %v554_v57 = vpop.f32.mrb[3].mxu1 }
  0xed   :  { %v678_v58 = vmax.f32 %v424_v48, 0.0  ;;  %v710_v59 = vmax.f32 %v552_v49, 0.0  ;;  %v427_v60 = vadd.f32 %v1207_v41, %v426_v56  ;;  %v555_v61 = vadd.f32 %v1207_v41, %v554_v57 }
  0xee   :  { %745 = vst.msk [vmem:[%s1532_s3 + $0x10] sm:$0xff] %vm742_vm3, %v680_v52  ;;  %777 = vst.msk [vmem:[%s1532_s3 + $0x110] sm:$0xff] %vm742_vm3, %v712_v53  ;;  %v681_v62 = vmax.f32 %v435_v54, 0.0  ;;  %v713_v63 = vmax.f32 %v563_v55, 0.0 }
  0xef   :  { %743 = vst.msk [vmem:[%s1532_s3] sm:$0xff] %vm742_vm3, %v678_v58  ;;  %775 = vst.msk [vmem:[%s1532_s3 + $0x100] sm:$0xff] %vm742_vm3, %v710_v59  ;;  %v679_v0 = vmax.f32 %v427_v60, 0.0  ;;  %v711_v1 = vmax.f32 %v555_v61, 0.0 }
  0xf0   :  { %746 = vst.msk [vmem:[%s1532_s3 + $0x18] sm:$0xff] %vm742_vm3, %v681_v62  ;;  %778 = vst.msk [vmem:[%s1532_s3 + $0x118] sm:$0xff] %vm742_vm3, %v713_v63 }
  0xf1   :  { %744 = vst.msk [vmem:[%s1532_s3 + $0x8] sm:$0xff] %vm742_vm3, %v679_v0  ;;  %776 = vst.msk [vmem:[%s1532_s3 + $0x108] sm:$0xff] %vm742_vm3, %v711_v1  ;;  %v934_v2 = vpop.f32.mrb[4].mxu0  ;;  %v966_v3 = vpop.f32.mrb[4].mxu1 }
  0xf2   :  { %v448_v4 = vadd.f32 %v934_v2, %v1207_v41  ;;  %v576_v5 = vadd.f32 %v966_v3, %v1207_v41  ;;  %v439_v6 = vpop.f32.mrb[5].mxu0  ;;  %v567_v7 = vpop.f32.mrb[5].mxu1 }
  0xf3   :  { %v440_v8 = vadd.f32 %v1207_v41, %v439_v6  ;;  %v568_v9 = vadd.f32 %v1207_v41, %v567_v7  ;;  %v935_v10 = vpop.f32.mrb[6].mxu0  ;;  %v967_v11 = vpop.f32.mrb[6].mxu1 }
  0xf4   :  { %v684_v12 = vmax.f32 %v448_v4, 0.0  ;;  %v716_v13 = vmax.f32 %v576_v5, 0.0  ;;  %v451_v14 = vadd.f32 %v935_v10, %v1207_v41  ;;  %v579_v15 = vadd.f32 %v967_v11, %v1207_v41  ;;  %v442_v16 = vpop.f32.mrb[7].mxu0  ;;  %v570_v17 = vpop.f32.mrb[7].mxu1 }
  0xf5   :  { %v682_v18 = vmax.f32 %v440_v8, 0.0  ;;  %v714_v19 = vmax.f32 %v568_v9, 0.0  ;;  %v443_v20 = vadd.f32 %v1207_v41, %v442_v16  ;;  %v571_v21 = vadd.f32 %v1207_v41, %v570_v17 }
  0xf6   :  { %749 = vst.msk [vmem:[%s1532_s3 + $0x30] sm:$0xff] %vm742_vm3, %v684_v12  ;;  %781 = vst.msk [vmem:[%s1532_s3 + $0x130] sm:$0xff] %vm742_vm3, %v716_v13  ;;  %v685_v22 = vmax.f32 %v451_v14, 0.0  ;;  %v717_v23 = vmax.f32 %v579_v15, 0.0 }
  0xf7   :  { %747 = vst.msk [vmem:[%s1532_s3 + $0x20] sm:$0xff] %vm742_vm3, %v682_v18  ;;  %779 = vst.msk [vmem:[%s1532_s3 + $0x120] sm:$0xff] %vm742_vm3, %v714_v19  ;;  %v683_v24 = vmax.f32 %v443_v20, 0.0  ;;  %v715_v25 = vmax.f32 %v571_v21, 0.0 }
  0xf8   :  { %750 = vst.msk [vmem:[%s1532_s3 + $0x38] sm:$0xff] %vm742_vm3, %v685_v22  ;;  %782 = vst.msk [vmem:[%s1532_s3 + $0x138] sm:$0xff] %vm742_vm3, %v717_v23 }
  0xf9   :  { %748 = vst.msk [vmem:[%s1532_s3 + $0x28] sm:$0xff] %vm742_vm3, %v683_v24  ;;  %780 = vst.msk [vmem:[%s1532_s3 + $0x128] sm:$0xff] %vm742_vm3, %v715_v25  ;;  %v938_v26 = vpop.f32.mrb[8].mxu0  ;;  %v970_v27 = vpop.f32.mrb[8].mxu1 }
  0xfa   :  { %v464_v28 = vadd.f32 %v938_v26, %v1207_v41  ;;  %v592_v29 = vadd.f32 %v970_v27, %v1207_v41  ;;  %v455_v30 = vpop.f32.mrb[9].mxu0  ;;  %v583_v31 = vpop.f32.mrb[9].mxu1 }
  0xfb   :  { %v456_v32 = vadd.f32 %v1207_v41, %v455_v30  ;;  %v584_v33 = vadd.f32 %v1207_v41, %v583_v31  ;;  %v939_v34 = vpop.f32.mrb[10].mxu0  ;;  %v971_v35 = vpop.f32.mrb[10].mxu1 }
  0xfc   :  { %v688_v36 = vmax.f32 %v464_v28, 0.0  ;;  %v720_v37 = vmax.f32 %v592_v29, 0.0  ;;  %v467_v38 = vadd.f32 %v939_v34, %v1207_v41  ;;  %v595_v39 = vadd.f32 %v971_v35, %v1207_v41  ;;  %v458_v40 = vpop.f32.mrb[11].mxu0  ;;  %v586_v42 = vpop.f32.mrb[11].mxu1 }
  0xfd   :  { %v686_v43 = vmax.f32 %v456_v32, 0.0  ;;  %v718_v44 = vmax.f32 %v584_v33, 0.0  ;;  %v459_v45 = vadd.f32 %v1207_v41, %v458_v40  ;;  %v587_v46 = vadd.f32 %v1207_v41, %v586_v42 }
  0xfe   :  { %753 = vst.msk [vmem:[%s1532_s3 + $0x50] sm:$0xff] %vm742_vm3, %v688_v36  ;;  %785 = vst.msk [vmem:[%s1532_s3 + $0x150] sm:$0xff] %vm742_vm3, %v720_v37  ;;  %v689_v47 = vmax.f32 %v467_v38, 0.0  ;;  %v721_v48 = vmax.f32 %v595_v39, 0.0 }
  0xff   :  { %751 = vst.msk [vmem:[%s1532_s3 + $0x40] sm:$0xff] %vm742_vm3, %v686_v43  ;;  %783 = vst.msk [vmem:[%s1532_s3 + $0x140] sm:$0xff] %vm742_vm3, %v718_v44  ;;  %v687_v49 = vmax.f32 %v459_v45, 0.0  ;;  %v719_v50 = vmax.f32 %v587_v46, 0.0 }
 0x100   :  { %754 = vst.msk [vmem:[%s1532_s3 + $0x58] sm:$0xff] %vm742_vm3, %v689_v47  ;;  %786 = vst.msk [vmem:[%s1532_s3 + $0x158] sm:$0xff] %vm742_vm3, %v721_v48 }
 0x101   :  { %752 = vst.msk [vmem:[%s1532_s3 + $0x48] sm:$0xff] %vm742_vm3, %v687_v49  ;;  %784 = vst.msk [vmem:[%s1532_s3 + $0x148] sm:$0xff] %vm742_vm3, %v719_v50  ;;  %v942_v51 = vpop.f32.mrb[12].mxu0  ;;  %v974_v52 = vpop.f32.mrb[12].mxu1 }
 0x102   :  { %v480_v53 = vadd.f32 %v942_v51, %v1207_v41  ;;  %v608_v54 = vadd.f32 %v974_v52, %v1207_v41  ;;  %v471_v55 = vpop.f32.mrb[13].mxu0  ;;  %v599_v56 = vpop.f32.mrb[13].mxu1 }
 0x103   :  { %v472_v57 = vadd.f32 %v1207_v41, %v471_v55  ;;  %v600_v58 = vadd.f32 %v1207_v41, %v599_v56  ;;  %v943_v59 = vpop.f32.mrb[14].mxu0  ;;  %v975_v60 = vpop.f32.mrb[14].mxu1 }
 0x104   :  { %v692_v61 = vmax.f32 %v480_v53, 0.0  ;;  %v724_v62 = vmax.f32 %v608_v54, 0.0  ;;  %v483_v63 = vadd.f32 %v943_v59, %v1207_v41  ;;  %v611_v0 = vadd.f32 %v975_v60, %v1207_v41  ;;  %v474_v1 = vpop.f32.mrb[15].mxu0  ;;  %v602_v2 = vpop.f32.mrb[15].mxu1 }
 0x105   :  { %v690_v3 = vmax.f32 %v472_v57, 0.0  ;;  %v722_v4 = vmax.f32 %v600_v58, 0.0  ;;  %v475_v5 = vadd.f32 %v1207_v41, %v474_v1  ;;  %v603_v6 = vadd.f32 %v1207_v41, %v602_v2 }
 0x106   :  { %757 = vst.msk [vmem:[%s1532_s3 + $0x70] sm:$0xff] %vm742_vm3, %v692_v61  ;;  %789 = vst.msk [vmem:[%s1532_s3 + $0x170] sm:$0xff] %vm742_vm3, %v724_v62  ;;  %v693_v7 = vmax.f32 %v483_v63, 0.0  ;;  %v725_v8 = vmax.f32 %v611_v0, 0.0 }
 0x107   :  { %755 = vst.msk [vmem:[%s1532_s3 + $0x60] sm:$0xff] %vm742_vm3, %v690_v3  ;;  %787 = vst.msk [vmem:[%s1532_s3 + $0x160] sm:$0xff] %vm742_vm3, %v722_v4  ;;  %v691_v9 = vmax.f32 %v475_v5, 0.0  ;;  %v723_v10 = vmax.f32 %v603_v6, 0.0 }
 0x108   :  { %758 = vst.msk [vmem:[%s1532_s3 + $0x78] sm:$0xff] %vm742_vm3, %v693_v7  ;;  %790 = vst.msk [vmem:[%s1532_s3 + $0x178] sm:$0xff] %vm742_vm3, %v725_v8 }
 0x109   :  { %756 = vst.msk [vmem:[%s1532_s3 + $0x68] sm:$0xff] %vm742_vm3, %v691_v9  ;;  %788 = vst.msk [vmem:[%s1532_s3 + $0x168] sm:$0xff] %vm742_vm3, %v723_v10  ;;  %v946_v11 = vpop.f32.mrb[16].mxu0  ;;  %v978_v12 = vpop.f32.mrb[16].mxu1 }
 0x10a   :  { %v496_v13 = vadd.f32 %v946_v11, %v1207_v41  ;;  %v624_v14 = vadd.f32 %v978_v12, %v1207_v41  ;;  %v487_v15 = vpop.f32.mrb[17].mxu0  ;;  %v615_v16 = vpop.f32.mrb[17].mxu1 }
 0x10b   :  { %v488_v17 = vadd.f32 %v1207_v41, %v487_v15  ;;  %v616_v18 = vadd.f32 %v1207_v41, %v615_v16  ;;  %v947_v19 = vpop.f32.mrb[18].mxu0  ;;  %v979_v20 = vpop.f32.mrb[18].mxu1 }
 0x10c   :  { %v696_v21 = vmax.f32 %v496_v13, 0.0  ;;  %v728_v22 = vmax.f32 %v624_v14, 0.0  ;;  %v499_v23 = vadd.f32 %v947_v19, %v1207_v41  ;;  %v627_v24 = vadd.f32 %v979_v20, %v1207_v41  ;;  %v490_v25 = vpop.f32.mrb[19].mxu0  ;;  %v618_v26 = vpop.f32.mrb[19].mxu1 }
 0x10d   :  { %v694_v27 = vmax.f32 %v488_v17, 0.0  ;;  %v726_v28 = vmax.f32 %v616_v18, 0.0  ;;  %v491_v29 = vadd.f32 %v1207_v41, %v490_v25  ;;  %v619_v30 = vadd.f32 %v1207_v41, %v618_v26 }
 0x10e   :  { %761 = vst.msk [vmem:[%s1532_s3 + $0x90] sm:$0xff] %vm742_vm3, %v696_v21  ;;  %793 = vst.msk [vmem:[%s1532_s3 + $0x190] sm:$0xff] %vm742_vm3, %v728_v22  ;;  %v697_v31 = vmax.f32 %v499_v23, 0.0  ;;  %v729_v32 = vmax.f32 %v627_v24, 0.0 }
 0x10f   :  { %759 = vst.msk [vmem:[%s1532_s3 + $0x80] sm:$0xff] %vm742_vm3, %v694_v27  ;;  %791 = vst.msk [vmem:[%s1532_s3 + $0x180] sm:$0xff] %vm742_vm3, %v726_v28  ;;  %v695_v33 = vmax.f32 %v491_v29, 0.0  ;;  %v727_v34 = vmax.f32 %v619_v30, 0.0 }
 0x110   :  { %762 = vst.msk [vmem:[%s1532_s3 + $0x98] sm:$0xff] %vm742_vm3, %v697_v31  ;;  %794 = vst.msk [vmem:[%s1532_s3 + $0x198] sm:$0xff] %vm742_vm3, %v729_v32 }
 0x111   :  { %760 = vst.msk [vmem:[%s1532_s3 + $0x88] sm:$0xff] %vm742_vm3, %v695_v33  ;;  %792 = vst.msk [vmem:[%s1532_s3 + $0x188] sm:$0xff] %vm742_vm3, %v727_v34  ;;  %v950_v35 = vpop.f32.mrb[20].mxu0  ;;  %v982_v36 = vpop.f32.mrb[20].mxu1 }
 0x112   :  { %v512_v37 = vadd.f32 %v950_v35, %v1207_v41  ;;  %v640_v38 = vadd.f32 %v982_v36, %v1207_v41  ;;  %v503_v39 = vpop.f32.mrb[21].mxu0  ;;  %v631_v40 = vpop.f32.mrb[21].mxu1 }
 0x113   :  { %v504_v42 = vadd.f32 %v1207_v41, %v503_v39  ;;  %v632_v43 = vadd.f32 %v1207_v41, %v631_v40  ;;  %v951_v44 = vpop.f32.mrb[22].mxu0  ;;  %v983_v45 = vpop.f32.mrb[22].mxu1 }
 0x114   :  { %v700_v46 = vmax.f32 %v512_v37, 0.0  ;;  %v732_v47 = vmax.f32 %v640_v38, 0.0  ;;  %v515_v48 = vadd.f32 %v951_v44, %v1207_v41  ;;  %v643_v49 = vadd.f32 %v983_v45, %v1207_v41  ;;  %v506_v50 = vpop.f32.mrb[23].mxu0  ;;  %v634_v51 = vpop.f32.mrb[23].mxu1 }
 0x115   :  { %v698_v52 = vmax.f32 %v504_v42, 0.0  ;;  %v730_v53 = vmax.f32 %v632_v43, 0.0  ;;  %v507_v54 = vadd.f32 %v1207_v41, %v506_v50  ;;  %v635_v55 = vadd.f32 %v1207_v41, %v634_v51 }
 0x116   :  { %765 = vst.msk [vmem:[%s1532_s3 + $0xb0] sm:$0xff] %vm742_vm3, %v700_v46  ;;  %797 = vst.msk [vmem:[%s1532_s3 + $0x1b0] sm:$0xff] %vm742_vm3, %v732_v47  ;;  %v701_v56 = vmax.f32 %v515_v48, 0.0  ;;  %v733_v57 = vmax.f32 %v643_v49, 0.0 }
 0x117   :  { %763 = vst.msk [vmem:[%s1532_s3 + $0xa0] sm:$0xff] %vm742_vm3, %v698_v52  ;;  %795 = vst.msk [vmem:[%s1532_s3 + $0x1a0] sm:$0xff] %vm742_vm3, %v730_v53  ;;  %v699_v58 = vmax.f32 %v507_v54, 0.0  ;;  %v731_v59 = vmax.f32 %v635_v55, 0.0 }
 0x118   :  { %766 = vst.msk [vmem:[%s1532_s3 + $0xb8] sm:$0xff] %vm742_vm3, %v701_v56  ;;  %798 = vst.msk [vmem:[%s1532_s3 + $0x1b8] sm:$0xff] %vm742_vm3, %v733_v57 }
 0x119   :  { %764 = vst.msk [vmem:[%s1532_s3 + $0xa8] sm:$0xff] %vm742_vm3, %v699_v58  ;;  %796 = vst.msk [vmem:[%s1532_s3 + $0x1a8] sm:$0xff] %vm742_vm3, %v731_v59  ;;  %v954_v60 = vpop.f32.mrb[24].mxu0  ;;  %v986_v61 = vpop.f32.mrb[24].mxu1 }
 0x11a   :  { %v528_v62 = vadd.f32 %v954_v60, %v1207_v41  ;;  %v656_v63 = vadd.f32 %v986_v61, %v1207_v41  ;;  %v519_v0 = vpop.f32.mrb[25].mxu0  ;;  %v647_v1 = vpop.f32.mrb[25].mxu1 }
 0x11b   :  { %v520_v2 = vadd.f32 %v1207_v41, %v519_v0  ;;  %v648_v3 = vadd.f32 %v1207_v41, %v647_v1  ;;  %v955_v4 = vpop.f32.mrb[26].mxu0  ;;  %v987_v5 = vpop.f32.mrb[26].mxu1 }
 0x11c   :  { %v704_v6 = vmax.f32 %v528_v62, 0.0  ;;  %v736_v7 = vmax.f32 %v656_v63, 0.0  ;;  %v531_v8 = vadd.f32 %v955_v4, %v1207_v41  ;;  %v659_v9 = vadd.f32 %v987_v5, %v1207_v41  ;;  %v522_v10 = vpop.f32.mrb[27].mxu0  ;;  %v650_v11 = vpop.f32.mrb[27].mxu1 }
 0x11d   :  { %v702_v12 = vmax.f32 %v520_v2, 0.0  ;;  %v734_v13 = vmax.f32 %v648_v3, 0.0  ;;  %v523_v14 = vadd.f32 %v1207_v41, %v522_v10  ;;  %v651_v15 = vadd.f32 %v1207_v41, %v650_v11 }
 0x11e   :  { %769 = vst.msk [vmem:[%s1532_s3 + $0xd0] sm:$0xff] %vm742_vm3, %v704_v6  ;;  %801 = vst.msk [vmem:[%s1532_s3 + $0x1d0] sm:$0xff] %vm742_vm3, %v736_v7  ;;  %v705_v16 = vmax.f32 %v531_v8, 0.0  ;;  %v737_v17 = vmax.f32 %v659_v9, 0.0 }
 0x11f   :  { %767 = vst.msk [vmem:[%s1532_s3 + $0xc0] sm:$0xff] %vm742_vm3, %v702_v12  ;;  %799 = vst.msk [vmem:[%s1532_s3 + $0x1c0] sm:$0xff] %vm742_vm3, %v734_v13  ;;  %v703_v18 = vmax.f32 %v523_v14, 0.0  ;;  %v735_v19 = vmax.f32 %v651_v15, 0.0 }
 0x120   :  { %770 = vst.msk [vmem:[%s1532_s3 + $0xd8] sm:$0xff] %vm742_vm3, %v705_v16  ;;  %802 = vst.msk [vmem:[%s1532_s3 + $0x1d8] sm:$0xff] %vm742_vm3, %v737_v17 }
 0x121   :  { %768 = vst.msk [vmem:[%s1532_s3 + $0xc8] sm:$0xff] %vm742_vm3, %v703_v18  ;;  %800 = vst.msk [vmem:[%s1532_s3 + $0x1c8] sm:$0xff] %vm742_vm3, %v735_v19  ;;  %v958_v20 = vpop.f32.mrb[28].mxu0  ;;  %v990_v21 = vpop.f32.mrb[28].mxu1 }
 0x122   :  { %v544_v22 = vadd.f32 %v958_v20, %v1207_v41  ;;  %v672_v23 = vadd.f32 %v990_v21, %v1207_v41  ;;  %v535_v24 = vpop.f32.mrb[29].mxu0  ;;  %v663_v25 = vpop.f32.mrb[29].mxu1 }
 0x123   :  { %v536_v26 = vadd.f32 %v1207_v41, %v535_v24  ;;  %v664_v27 = vadd.f32 %v1207_v41, %v663_v25  ;;  %v959_v28 = vpop.f32.mrb[30].mxu0  ;;  %v991_v29 = vpop.f32.mrb[30].mxu1 }
 0x124   :  { %v708_v30 = vmax.f32 %v544_v22, 0.0  ;;  %v740_v31 = vmax.f32 %v672_v23, 0.0  ;;  %v547_v32 = vadd.f32 %v959_v28, %v1207_v41  ;;  %v675_v33 = vadd.f32 %v991_v29, %v1207_v41  ;;  %v538_v34 = vpop.f32.mrb[31].mxu0  ;;  %v666_v35 = vpop.f32.mrb[31].mxu1 }
 0x125   :  { %v706_v36 = vmax.f32 %v536_v26, 0.0  ;;  %v738_v37 = vmax.f32 %v664_v27, 0.0  ;;  %v539_v38 = vadd.f32 %v1207_v41, %v538_v34  ;;  %v667_v39 = vadd.f32 %v1207_v41, %v666_v35 }
 0x126   :  { %773 = vst.msk [vmem:[%s1532_s3 + $0xf0] sm:$0xff] %vm742_vm3, %v708_v30  ;;  %805 = vst.msk [vmem:[%s1532_s3 + $0x1f0] sm:$0xff] %vm742_vm3, %v740_v31  ;;  %v709_v40 = vmax.f32 %v547_v32, 0.0  ;;  %v741_v42 = vmax.f32 %v675_v33, 0.0 }
 0x127   :  { %771 = vst.msk [vmem:[%s1532_s3 + $0xe0] sm:$0xff] %vm742_vm3, %v706_v36  ;;  %803 = vst.msk [vmem:[%s1532_s3 + $0x1e0] sm:$0xff] %vm742_vm3, %v738_v37  ;;  %v707_v41 = vmax.f32 %v539_v38, 0.0  ;;  %v739_v43 = vmax.f32 %v667_v39, 0.0 }
 0x128   :  { %774 = vst.msk [vmem:[%s1532_s3 + $0xf8] sm:$0xff] %vm742_vm3, %v709_v40  ;;  %806 = vst.msk [vmem:[%s1532_s3 + $0x1f8] sm:$0xff] %vm742_vm3, %v741_v42 }
 0x129   :  { %772 = vst.msk [vmem:[%s1532_s3 + $0xe8] sm:$0xff] %vm742_vm3, %v707_v41  ;;  %804 = vst.msk [vmem:[%s1532_s3 + $0x1e8] sm:$0xff] %vm742_vm3, %v739_v43 }

</bundles_post_ra>
